<compile_context>
chip_gen: v7x
topology: tpu7x:2x2x1
jax: 0.10.0
libtpu: 0.0.40
codegen_flags: <defaults>
</compile_context>

<pallas_src>
import functools
import jax
import jax.numpy as jnp
from jax.experimental import pallas as pl
from jax.experimental.pallas import tpu as pltpu

HIDDEN = 32  # hidden channels of conv1 / prj1 (fixed by the PyTorch module)

# Active (unmasked) taps of the PixelCNN 3x3 mask, in (ky, kx) order.
# mask[2,2]=0, mask[1,1:]=0, mask[2,:]=0  =>  active taps: (0,0),(0,1),(0,2),(1,0)
ACTIVE_TAPS = ((0, 0), (0, 1), (0, 2), (1, 0))


def _round_up(v, m):
    return ((v + m - 1) // m) * m


def pixelcnn_kernel(x_ref, cond_ref, masks_ref, w1_ref, b1_ref, w2_ref, b2_ref,
                    out_ref, *, width):
    # x_ref    : (cin_pad,   P)   P = N*H*W; channels on sublanes, pixels on lanes
    # cond_ref : (ccond_pad, P)
    # masks_ref: (4, 1, P)        per-tap boundary masks (1.0 in-image, 0.0 at halo)
    # w1_ref   : (HIDDEN, 4*cin_pad + ccond_pad)   conv1 taps + 1x1 proj, fused LHS
    # b1_ref   : (HIDDEN, 1)      fused bias b1 + bp
    # w2_ref   : (4, Cout, HIDDEN) conv2 weights per active tap, (O, I)
    # b2_ref   : (Cout, 1)
    # out_ref  : (Cout, P)
    shifts = (width + 1, width, width - 1, 1)   # lane shift per active tap

    x = x_ref[...]
    cond = cond_ref[...]
    # Load each boundary mask once; reused for conv1 RHS and conv2 output rolls.
    masks = [masks_ref[t] for t in range(4)]    # each (1, P)

    # conv1 (4 active masked-conv taps) + 1x1 conditional projection -> ONE matmul.
    # All concat pieces are 8-sublane-aligned (padded in the wrapper).
    rhs = jnp.concatenate(
        [pltpu.roll(x, shifts[t], 1) * masks[t] for t in range(4)] + [cond],
        axis=0)                                                    # (K, P)
    h = jnp.dot(w1_ref[...], rhs, preferred_element_type=jnp.float32)
    h = jnp.maximum(h + b1_ref[...], 0.0)                          # (HIDDEN, P)

    # conv2: roll-after-matmul commute; rolls touch only (Cout, P) products.
    out = b1_ref.dtype.type(0.0) + b2_ref[...]                     # (Cout, 1) -> bcast
    for t in range(4):
        y = jnp.dot(w2_ref[t], h, preferred_element_type=jnp.float32)  # (Cout, P)
        out = out + pltpu.roll(y, shifts[t], 1) * masks[t]
    out_ref[...] = out.astype(out_ref.dtype)


@jax.jit
def simple_pixelcnn_forward(x_nchw, cond_nchw, params):
    """Forward pass matching SimplePixelCNNNet(x, sample=False, conditional=cond)."""
    # TODO(synk): the unconditional (num_conditional=None) variant is not implemented.
    w1, b1, wp, bp, w2, b2 = params
    N, Cin, H, W = x_nchw.shape
    Ccond = cond_nchw.shape[1]
    Cout = w2.shape[-1]
    P = N * H * W
    # TODO(synk): pad the flattened pixel axis when N*H*W is not a multiple of 128.
    assert P % 128 == 0, "kernel assumes N*H*W is a multiple of 128"

    cin_pad = _round_up(Cin, 8)
    ccond_pad = _round_up(Ccond, 8)

    # Fold batch into the lane axis: NCHW -> (C, N*H*W); pad channels to 8-aligned
    # sublane slots so the in-kernel concat is aligned (zero-cost sublane copies).
    x = jnp.transpose(x_nchw, (1, 0, 2, 3)).reshape(Cin, P).astype(jnp.float32)
    cond = jnp.transpose(cond_nchw, (1, 0, 2, 3)).reshape(Ccond, P).astype(jnp.float32)
    x = jnp.pad(x, ((0, cin_pad - Cin), (0, 0)))
    cond = jnp.pad(cond, ((0, ccond_pad - Ccond), (0, 0)))

    # Per-tap boundary masks (compile-time constants). row/col are per-image, so the
    # same masks also zero pltpu.roll wrap-around across image boundaries.
    pidx = jnp.arange(P, dtype=jnp.int32)
    col = pidx % W
    row = (pidx // W) % H
    m_top = (row >= 1).astype(jnp.float32)        # source row y-1 valid
    m_left = (col >= 1).astype(jnp.float32)       # source col x-1 valid
    m_right = (col <= W - 2).astype(jnp.float32)  # source col x+1 valid
    tap_masks = jnp.stack(
        [m_top * m_left, m_top, m_top * m_right, m_left]).reshape(4, 1, P)

    # Trace-time weight prep (free). Only the 4 active taps are used, so the PixelCNN
    # mask is implicitly applied even if raw (unmasked) weights are passed in.
    w1_blk = [jnp.pad(w1[ky, kx].T, ((0, 0), (0, cin_pad - Cin)))
              for ky, kx in ACTIVE_TAPS]                               # 4 x (HIDDEN, cin_pad)
    wp_blk = jnp.pad(wp.T, ((0, 0), (0, ccond_pad - Ccond)))           # (HIDDEN, ccond_pad)
    w1f = jnp.concatenate(w1_blk + [wp_blk], axis=1)                   # (HIDDEN, K)
    w2s = jnp.stack([w2[ky, kx].T for ky, kx in ACTIVE_TAPS], axis=0)  # (4, Cout, HIDDEN)
    b1f = (b1 + bp).reshape(HIDDEN, 1)
    b2c = b2.reshape(Cout, 1)
    K1 = 4 * cin_pad + ccond_pad

    kernel = functools.partial(pixelcnn_kernel, width=W)

    out_flat = pl.pallas_call(
        kernel,
        out_shape=jax.ShapeDtypeStruct((Cout, P), jnp.float32),
        grid=(1,),  # single step: whole problem is ~1 MFLOP, fixed-overhead bound
        in_specs=[
            pl.BlockSpec((cin_pad, P), lambda i: (0, 0)),
            pl.BlockSpec((ccond_pad, P), lambda i: (0, 0)),
            pl.BlockSpec((4, 1, P), lambda i: (0, 0, 0)),
            pl.BlockSpec((HIDDEN, K1), lambda i: (0, 0)),
            pl.BlockSpec((HIDDEN, 1), lambda i: (0, 0)),
            pl.BlockSpec((4, Cout, HIDDEN), lambda i: (0, 0, 0)),
            pl.BlockSpec((Cout, 1), lambda i: (0, 0)),
        ],
        out_specs=pl.BlockSpec((Cout, P), lambda i: (0, 0)),
        compiler_params=pltpu.CompilerParams(dimension_semantics=("arbitrary",)),
    )(x, cond, tap_masks, w1f, b1f, w2s, b2c)

    # (Cout, N*H*W) -> (N, Cout, H, W)
    return jnp.transpose(out_flat.reshape(Cout, N, H, W), (1, 0, 2, 3))


def make_params(key, input_channels, output_channels, num_conditional):
    """Deterministic synthetic parameters; conv weights in HWIO, NOT pre-masked
    (the kernel only reads the active taps, the reference applies the mask)."""
    k1, k2, k3, k4, k5, k6 = jax.random.split(key, 6)
    w1 = 0.1 * jax.random.normal(k1, (3, 3, input_channels, HIDDEN), jnp.float32)
    b1 = 0.05 * jax.random.normal(k2, (HIDDEN,), jnp.float32)
    wp = 0.1 * jax.random.normal(k3, (num_conditional, HIDDEN), jnp.float32)
    bp = 0.05 * jax.random.normal(k4, (HIDDEN,), jnp.float32)
    w2 = 0.1 * jax.random.normal(k5, (3, 3, HIDDEN, output_channels), jnp.float32)
    b2 = 0.05 * jax.random.normal(k6, (output_channels,), jnp.float32)
    return (w1, b1, wp, bp, w2, b2)


def reference_forward(x_nchw, cond_nchw, params):
    """Pure-JAX reference (lax conv, PixelCNN mask applied) for a correctness check."""
    w1, b1, wp, bp, w2, b2 = params
    mask = jnp.array([[1.0, 1.0, 1.0],
                      [1.0, 0.0, 0.0],
                      [0.0, 0.0, 0.0]], dtype=jnp.float32)[:, :, None, None]
    w1m, w2m = w1 * mask, w2 * mask
    dn = ("NHWC", "HWIO", "NHWC")
    x = jnp.transpose(x_nchw, (0, 2, 3, 1)).astype(jnp.float32)
    cond = jnp.transpose(cond_nchw, (0, 2, 3, 1)).astype(jnp.float32)
    h = jax.lax.conv_general_dilated(x, w1m, (1, 1), [(1, 1), (1, 1)],
                                     dimension_numbers=dn) + b1
    prj = jax.lax.conv_general_dilated(cond, wp.reshape(1, 1, *wp.shape), (1, 1),
                                       "VALID", dimension_numbers=dn) + bp
    h = jax.nn.relu(h + prj)
    o = jax.lax.conv_general_dilated(h, w2m, (1, 1), [(1, 1), (1, 1)],
                                     dimension_numbers=dn) + b2
    return jnp.transpose(o, (0, 3, 1, 2))


if __name__ == "__main__":
    N, Cin, Cout, Ccond, H, W = 2, 3, 5, 9, 16, 16

    key = jax.random.PRNGKey(0)
    kx, kc, kp = jax.random.split(key, 3)
    x = jax.random.uniform(kx, (N, Cin, H, W), jnp.float32)          # NCHW, like torch.rand
    conditional = jax.random.uniform(kc, (N, Ccond, H, W), jnp.float32)
    params = make_params(kp, Cin, Cout, Ccond)

    out = simple_pixelcnn_forward(x, conditional, params)
    out = jax.block_until_ready(out)

    ref = reference_forward(x, conditional, params)
    assert out.shape == (N, Cout, H, W), out.shape
    assert jnp.allclose(out, ref, atol=1e-3, rtol=1e-3), "mismatch vs JAX reference"

    print("KERNEL_OK")
</pallas_src>

<mosaic_0001>
module attributes {stable_mosaic.version = 11 : i64} {
  func.func @pixelcnn_kernel(%arg0: i32, %arg1: memref<8x512xf32, #tpu.memory_space<vmem>>, %arg2: memref<16x512xf32, #tpu.memory_space<vmem>>, %arg3: memref<4x1x512xf32, #tpu.memory_space<vmem>>, %arg4: memref<32x48xf32, #tpu.memory_space<vmem>>, %arg5: memref<32x1xf32, #tpu.memory_space<vmem>>, %arg6: memref<4x5x32xf32, #tpu.memory_space<vmem>>, %arg7: memref<5x1xf32, #tpu.memory_space<vmem>>, %arg8: memref<5x512xf32, #tpu.memory_space<vmem>>) attributes {dimension_semantics = [#tpu.dimension_semantics<arbitrary>], iteration_bounds = array<i64: 1>, scalar_prefetch = 0 : i64, scratch_operands = 0 : i64, tpu.core_type = #tpu.core_type<tc>, window_params = [{pipeline_mode = #tpu.pipeline_mode<synchronous>, transform_indices = @transform_0, window_bounds = array<i64: 8, 512>}, {pipeline_mode = #tpu.pipeline_mode<synchronous>, transform_indices = @transform_1, window_bounds = array<i64: 16, 512>}, {pipeline_mode = #tpu.pipeline_mode<synchronous>, transform_indices = @transform_2, window_bounds = array<i64: 4, 1, 512>}, {pipeline_mode = #tpu.pipeline_mode<synchronous>, transform_indices = @transform_3, window_bounds = array<i64: 32, 48>}, {pipeline_mode = #tpu.pipeline_mode<synchronous>, transform_indices = @transform_4, window_bounds = array<i64: 32, 1>}, {pipeline_mode = #tpu.pipeline_mode<synchronous>, transform_indices = @transform_5, window_bounds = array<i64: 4, 5, 32>}, {pipeline_mode = #tpu.pipeline_mode<synchronous>, transform_indices = @transform_6, window_bounds = array<i64: 5, 1>}, {pipeline_mode = #tpu.pipeline_mode<synchronous>, transform_indices = @transform_7, window_bounds = array<i64: 5, 512>}]} {
    %c0 = arith.constant 0 : index
    %c0_0 = arith.constant 0 : index
    %0 = vector.load %arg1[%c0, %c0_0] : memref<8x512xf32, #tpu.memory_space<vmem>>, vector<8x512xf32>
    %c0_1 = arith.constant 0 : index
    %c0_2 = arith.constant 0 : index
    %1 = vector.load %arg2[%c0_1, %c0_2] : memref<16x512xf32, #tpu.memory_space<vmem>>, vector<16x512xf32>
    %c0_3 = arith.constant 0 : index
    %c0_4 = arith.constant 0 : index
    %c0_5 = arith.constant 0 : index
    %2 = vector.load %arg3[%c0_3, %c0_4, %c0_5] : memref<4x1x512xf32, #tpu.memory_space<vmem>>, vector<1x1x512xf32>
    %3 = vector.shape_cast %2 : vector<1x1x512xf32> to vector<1x512xf32>
    %c1 = arith.constant 1 : index
    %c0_6 = arith.constant 0 : index
    %c0_7 = arith.constant 0 : index
    %4 = vector.load %arg3[%c1, %c0_6, %c0_7] : memref<4x1x512xf32, #tpu.memory_space<vmem>>, vector<1x1x512xf32>
    %5 = vector.shape_cast %4 : vector<1x1x512xf32> to vector<1x512xf32>
    %c2 = arith.constant 2 : index
    %c0_8 = arith.constant 0 : index
    %c0_9 = arith.constant 0 : index
    %6 = vector.load %arg3[%c2, %c0_8, %c0_9] : memref<4x1x512xf32, #tpu.memory_space<vmem>>, vector<1x1x512xf32>
    %7 = vector.shape_cast %6 : vector<1x1x512xf32> to vector<1x512xf32>
    %c3 = arith.constant 3 : index
    %c0_10 = arith.constant 0 : index
    %c0_11 = arith.constant 0 : index
    %8 = vector.load %arg3[%c3, %c0_10, %c0_11] : memref<4x1x512xf32, #tpu.memory_space<vmem>>, vector<1x1x512xf32>
    %9 = vector.shape_cast %8 : vector<1x1x512xf32> to vector<1x512xf32>
    %c17_i32 = arith.constant 17 : i32
    %10 = tpu.dynamic_rotate %0 by %c17_i32 dim 1 : vector<8x512xf32>, i32 -> vector<8x512xf32>
    %11 = vector.broadcast %3 : vector<1x512xf32> to vector<8x512xf32>
    %12 = arith.mulf %10, %11 : vector<8x512xf32>
    %c16_i32 = arith.constant 16 : i32
    %13 = tpu.dynamic_rotate %0 by %c16_i32 dim 1 : vector<8x512xf32>, i32 -> vector<8x512xf32>
    %14 = vector.broadcast %5 : vector<1x512xf32> to vector<8x512xf32>
    %15 = arith.mulf %13, %14 : vector<8x512xf32>
    %c15_i32 = arith.constant 15 : i32
    %16 = tpu.dynamic_rotate %0 by %c15_i32 dim 1 : vector<8x512xf32>, i32 -> vector<8x512xf32>
    %17 = vector.broadcast %7 : vector<1x512xf32> to vector<8x512xf32>
    %18 = arith.mulf %16, %17 : vector<8x512xf32>
    %c1_i32 = arith.constant 1 : i32
    %19 = tpu.dynamic_rotate %0 by %c1_i32 dim 1 : vector<8x512xf32>, i32 -> vector<8x512xf32>
    %20 = vector.broadcast %9 : vector<1x512xf32> to vector<8x512xf32>
    %21 = arith.mulf %19, %20 : vector<8x512xf32>
    %22 = tpu.concatenate %12, %15, %18, %21, %1 in 0 : vector<8x512xf32>, vector<8x512xf32>, vector<8x512xf32>, vector<8x512xf32>, vector<16x512xf32> -> vector<48x512xf32>
    %c0_12 = arith.constant 0 : index
    %c0_13 = arith.constant 0 : index
    %23 = vector.load %arg4[%c0_12, %c0_13] : memref<32x48xf32, #tpu.memory_space<vmem>>, vector<32x48xf32>
    %cst = arith.constant dense<0.000000e+00> : vector<32x512xf32>
    %24 = tpu.matmul %23, %22, %cst {dimension_numbers = #tpu.dot_dimension_numbers<[1], [0], [0], [1], [0, 0, 1, 1], [], []>} : vector<32x48xf32>, vector<48x512xf32>, vector<32x512xf32> -> vector<32x512xf32>
    %c0_14 = arith.constant 0 : index
    %c0_15 = arith.constant 0 : index
    %25 = vector.load %arg5[%c0_14, %c0_15] : memref<32x1xf32, #tpu.memory_space<vmem>>, vector<32x1xf32>
    %26 = vector.broadcast %25 : vector<32x1xf32> to vector<32x512xf32>
    %27 = arith.addf %24, %26 : vector<32x512xf32>
    %cst_16 = arith.constant 0.000000e+00 : f32
    %28 = vector.broadcast %cst_16 : f32 to vector<32x512xf32>
    %29 = arith.maximumf %27, %28 : vector<32x512xf32>
    %c0_17 = arith.constant 0 : index
    %c0_18 = arith.constant 0 : index
    %30 = vector.load %arg7[%c0_17, %c0_18] : memref<5x1xf32, #tpu.memory_space<vmem>>, vector<5x1xf32>
    %cst_19 = arith.constant 0.000000e+00 : f32
    %31 = vector.broadcast %cst_19 : f32 to vector<5x1xf32>
    %32 = arith.addf %31, %30 : vector<5x1xf32>
    %c0_20 = arith.constant 0 : index
    %c0_21 = arith.constant 0 : index
    %c0_22 = arith.constant 0 : index
    %33 = vector.load %arg6[%c0_20, %c0_21, %c0_22] : memref<4x5x32xf32, #tpu.memory_space<vmem>>, vector<1x5x32xf32>
    %34 = vector.shape_cast %33 : vector<1x5x32xf32> to vector<5x32xf32>
    %cst_23 = arith.constant dense<0.000000e+00> : vector<5x512xf32>
    %35 = tpu.matmul %34, %29, %cst_23 {dimension_numbers = #tpu.dot_dimension_numbers<[1], [0], [0], [1], [0, 0, 1, 1], [], []>} : vector<5x32xf32>, vector<32x512xf32>, vector<5x512xf32> -> vector<5x512xf32>
    %c17_i32_24 = arith.constant 17 : i32
    %36 = tpu.dynamic_rotate %35 by %c17_i32_24 dim 1 : vector<5x512xf32>, i32 -> vector<5x512xf32>
    %37 = vector.broadcast %3 : vector<1x512xf32> to vector<5x512xf32>
    %38 = arith.mulf %36, %37 : vector<5x512xf32>
    %39 = vector.broadcast %32 : vector<5x1xf32> to vector<5x512xf32>
    %40 = arith.addf %39, %38 : vector<5x512xf32>
    %c1_25 = arith.constant 1 : index
    %c0_26 = arith.constant 0 : index
    %c0_27 = arith.constant 0 : index
    %41 = vector.load %arg6[%c1_25, %c0_26, %c0_27] : memref<4x5x32xf32, #tpu.memory_space<vmem>>, vector<1x5x32xf32>
    %42 = vector.shape_cast %41 : vector<1x5x32xf32> to vector<5x32xf32>
    %cst_28 = arith.constant dense<0.000000e+00> : vector<5x512xf32>
    %43 = tpu.matmul %42, %29, %cst_28 {dimension_numbers = #tpu.dot_dimension_numbers<[1], [0], [0], [1], [0, 0, 1, 1], [], []>} : vector<5x32xf32>, vector<32x512xf32>, vector<5x512xf32> -> vector<5x512xf32>
    %c16_i32_29 = arith.constant 16 : i32
    %44 = tpu.dynamic_rotate %43 by %c16_i32_29 dim 1 : vector<5x512xf32>, i32 -> vector<5x512xf32>
    %45 = vector.broadcast %5 : vector<1x512xf32> to vector<5x512xf32>
    %46 = arith.mulf %44, %45 : vector<5x512xf32>
    %47 = arith.addf %40, %46 : vector<5x512xf32>
    %c2_30 = arith.constant 2 : index
    %c0_31 = arith.constant 0 : index
    %c0_32 = arith.constant 0 : index
    %48 = vector.load %arg6[%c2_30, %c0_31, %c0_32] : memref<4x5x32xf32, #tpu.memory_space<vmem>>, vector<1x5x32xf32>
    %49 = vector.shape_cast %48 : vector<1x5x32xf32> to vector<5x32xf32>
    %cst_33 = arith.constant dense<0.000000e+00> : vector<5x512xf32>
    %50 = tpu.matmul %49, %29, %cst_33 {dimension_numbers = #tpu.dot_dimension_numbers<[1], [0], [0], [1], [0, 0, 1, 1], [], []>} : vector<5x32xf32>, vector<32x512xf32>, vector<5x512xf32> -> vector<5x512xf32>
    %c15_i32_34 = arith.constant 15 : i32
    %51 = tpu.dynamic_rotate %50 by %c15_i32_34 dim 1 : vector<5x512xf32>, i32 -> vector<5x512xf32>
    %52 = vector.broadcast %7 : vector<1x512xf32> to vector<5x512xf32>
    %53 = arith.mulf %51, %52 : vector<5x512xf32>
    %54 = arith.addf %47, %53 : vector<5x512xf32>
    %c3_35 = arith.constant 3 : index
    %c0_36 = arith.constant 0 : index
    %c0_37 = arith.constant 0 : index
    %55 = vector.load %arg6[%c3_35, %c0_36, %c0_37] : memref<4x5x32xf32, #tpu.memory_space<vmem>>, vector<1x5x32xf32>
    %56 = vector.shape_cast %55 : vector<1x5x32xf32> to vector<5x32xf32>
    %cst_38 = arith.constant dense<0.000000e+00> : vector<5x512xf32>
    %57 = tpu.matmul %56, %29, %cst_38 {dimension_numbers = #tpu.dot_dimension_numbers<[1], [0], [0], [1], [0, 0, 1, 1], [], []>} : vector<5x32xf32>, vector<32x512xf32>, vector<5x512xf32> -> vector<5x512xf32>
    %c1_i32_39 = arith.constant 1 : i32
    %58 = tpu.dynamic_rotate %57 by %c1_i32_39 dim 1 : vector<5x512xf32>, i32 -> vector<5x512xf32>
    %59 = vector.broadcast %9 : vector<1x512xf32> to vector<5x512xf32>
    %60 = arith.mulf %58, %59 : vector<5x512xf32>
    %61 = arith.addf %54, %60 : vector<5x512xf32>
    %c0_40 = arith.constant 0 : index
    %c0_41 = arith.constant 0 : index
    %62 = vector.load %arg8[%c0_40, %c0_41] : memref<5x512xf32, #tpu.memory_space<vmem>>, vector<5x512xf32>
    tpu.vector_store %arg8[%c0_40, %c0_41], %61 {strides = array<i32>} : memref<5x512xf32, #tpu.memory_space<vmem>>, vector<5x512xf32>,
    return
  }
  func.func @transform_0(%arg0: i32) -> (i32, i32) {
    %c0_i32 = arith.constant 0 : i32
    %c0_i32_0 = arith.constant 0 : i32
    %c0_i32_1 = arith.constant 0 : i32
    return %c0_i32, %c0_i32_0 : i32, i32
  }
  func.func @transform_1(%arg0: i32) -> (i32, i32) {
    %c0_i32 = arith.constant 0 : i32
    %c0_i32_0 = arith.constant 0 : i32
    %c0_i32_1 = arith.constant 0 : i32
    return %c0_i32, %c0_i32_0 : i32, i32
  }
  func.func @transform_2(%arg0: i32) -> (i32, i32, i32) {
    %c0_i32 = arith.constant 0 : i32
    %c0_i32_0 = arith.constant 0 : i32
    %c0_i32_1 = arith.constant 0 : i32
    %c0_i32_2 = arith.constant 0 : i32
    return %c0_i32, %c0_i32_0, %c0_i32_1 : i32, i32, i32
  }
  func.func @transform_3(%arg0: i32) -> (i32, i32) {
    %c0_i32 = arith.constant 0 : i32
    %c0_i32_0 = arith.constant 0 : i32
    %c0_i32_1 = arith.constant 0 : i32
    return %c0_i32, %c0_i32_0 : i32, i32
  }
  func.func @transform_4(%arg0: i32) -> (i32, i32) {
    %c0_i32 = arith.constant 0 : i32
    %c0_i32_0 = arith.constant 0 : i32
    %c0_i32_1 = arith.constant 0 : i32
    return %c0_i32, %c0_i32_0 : i32, i32
  }
  func.func @transform_5(%arg0: i32) -> (i32, i32, i32) {
    %c0_i32 = arith.constant 0 : i32
    %c0_i32_0 = arith.constant 0 : i32
    %c0_i32_1 = arith.constant 0 : i32
    %c0_i32_2 = arith.constant 0 : i32
    return %c0_i32, %c0_i32_0, %c0_i32_1 : i32, i32, i32
  }
  func.func @transform_6(%arg0: i32) -> (i32, i32) {
    %c0_i32 = arith.constant 0 : i32
    %c0_i32_0 = arith.constant 0 : i32
    %c0_i32_1 = arith.constant 0 : i32
    return %c0_i32, %c0_i32_0 : i32, i32
  }
  func.func @transform_7(%arg0: i32) -> (i32, i32) {
    %c0_i32 = arith.constant 0 : i32
    %c0_i32_0 = arith.constant 0 : i32
    %c0_i32_1 = arith.constant 0 : i32
    return %c0_i32, %c0_i32_0 : i32, i32
  }
}

</mosaic_0001>

<bundles_post_ra>
// kernel: simple_pixelcnn_forward.1
= control target key start
LH: loop header
LB: loop body
LE: loop exit
PB: predicated region body
PF: predicated region fallthrough
CT: control target
= control target key end

     0   :  { %s1235_s28 = smov 17   ;;  %s1236_s10 = smov 16   ;;  %v1239_v4 = vmov 0.0   ;;  %v1240_v5 = vmov 0   ;;  %v53_v11 = vlaneseq  ;;  %vm227_vm4 = vcmask 392192   ;;  %s1602_s0 = inlined_call_operand.vmem [shape: f32[8,512], index: 0, kind: input, shape index: {}]   ;;  %s1603_s4 = inlined_call_operand.vmem [shape: f32[32,1], index: 4, kind: input, shape index: {}]   ;;  %s1604_s6 = inlined_call_operand.vmem [shape: f32[5,1], index: 6, kind: input, shape index: {}]   ;;  %s1605_s2 = inlined_call_operand.vmem [shape: f32[4,1,512], index: 2, kind: input, shape index: {}]   ;;  %s1606_s1 = inlined_call_operand.vmem [shape: f32[16,512], index: 1, kind: input, shape index: {}]   ;;  %s1607_s3 = inlined_call_operand.vmem [shape: f32[32,48], index: 3, kind: input, shape index: {}]   ;;  %s1608_s5 = inlined_call_operand.vmem [shape: f32[4,5,32], index: 5, kind: input, shape index: {}]   ;;  %s1609_s7 = inlined_call_operand.vmem [shape: f32[5,512], index: 7, kind: output, shape index: {}]  }
   0x1   :  { %v28_v0 = vld [vmem:[%s1602_s0 + $0x10] sm:$0xff]  ;;  %v26_v1 = vld [vmem:[%s1602_s0] sm:$0xff]  ;;  %v29_v2 = vld [vmem:[%s1602_s0 + $0x18] sm:$0xff]  ;;  %s1237_s11 = smov 15   ;;  %304 = vmatprep.mubr.f32.mxu0 %v1239_v4  ;;  %393 = vmatprep.mubr.f32.mxu1 %v1239_v4  ;;  %vm437_vm5 = vcmask 261120  }
   0x2   :  { %49 = vrot.lane.b32.xlu1 %v28_v0, %s1235_s28  ;;  %45 = vrot.lane.b32.xlu0 %v26_v1, %s1235_s28  ;;  %v27_v3 = vld [vmem:[%s1602_s0 + $0x8] sm:$0xff]  ;;  %s1238_s0 = smov 1   ;;  %v203_v7 = vld [vmem:[%s1603_s4] sm:$0xff]  ;;  %v62_v12 = vshrl.u32 %v53_v11, 7  ;;  %v1326_v15 = vand.u32 127, %v53_v11 }
   0x3   :  { %1234 = vset.pattern.permute.xlu1 %v1240_v5  ;;  %v204_v6 = vld [vmem:[%s1603_s4 + $0x8] sm:$0xff]  ;;  %1233 = vset.pattern.permute.xlu0 %v1240_v5  ;;  %v205_v8 = vld [vmem:[%s1603_s4 + $0x10] sm:$0xff]  ;;  %v206_v9 = vld [vmem:[%s1603_s4 + $0x18] sm:$0xff] }
   0x4   :  { %v434_v10 = vld [vmem:[%s1604_s6] sm:$0x1f]  ;;  %v67_v16 = vsub.s32 1, %v62_v12  ;;  %vm55_vm0 = vcmp.lt.s32.totalorder %v1326_v15, 17  ;;  %v63_v19 = vsub.s32 0, %v62_v12  ;;  %v71_v21 = vsub.s32 2, %v62_v12 }
   0x5   :  { %v38_v17 = vld [vmem:[%s1605_s2] sm:$0xf]  ;;  %v1117_v18 = vld [vmem:[%s1605_s2 + $0x4] sm:$0xf]  ;;  %v75_v23 = vsub.s32 3, %v62_v12  ;;  %vm93_vm1 = vcmp.lt.s32.totalorder %v1326_v15, 16 }
   0x6   :  { %51 = vrot.lane.b32.xlu1 %v29_v2, %s1235_s28  ;;  %47 = vrot.lane.b32.xlu0 %v27_v3, %s1235_s28  ;;  %v1336_v24 = vrot.slane %v38_v17, %v67_v16  ;;  %v1338_v25 = vrot.slane %v1117_v18, %v67_v16  ;;  %v1342_v27 = vrot.slane %v38_v17, %v63_v19  ;;  %v1118_v58 = vld [vmem:[%s1605_s2 + $0x8] sm:$0xf]  ;;  %v1119_v59 = vld [vmem:[%s1605_s2 + $0xc] sm:$0xf]  ;;  %vm131_vm2 = vcmp.lt.s32.totalorder %v1326_v15, 15 }
   0x7   :  { %v1344_v28 = vrot.slane %v38_v17, %v71_v21  ;;  %v1346_v31 = vrot.slane %v1117_v18, %v63_v19  ;;  %v1352_v34 = vrot.slane %v1117_v18, %v71_v21  ;;  %v1354_v35 = vrot.slane %v38_v17, %v75_v23 }
   0x8   :  { %v1360_v39 = vrot.slane %v1117_v18, %v75_v23  ;;  %v1383_v62 = vrot.slane %v1118_v58, %v67_v16  ;;  %vm169_vm3 = vcmp.lt.s32.totalorder %v1326_v15, 1  ;;  %v1386_v63 = vrot.slane %v1119_v59, %v67_v16 }
   0xa   :  { %87 = vrot.lane.b32.xlu1 %v27_v3, %s1236_s10  ;;  %85 = vrot.lane.b32.xlu0 %v26_v1, %s1236_s10 }
   0xe   :  { %91 = vrot.lane.b32.xlu1 %v29_v2, %s1236_s10  ;;  %89 = vrot.lane.b32.xlu0 %v28_v0, %s1236_s10 }
  0x12   :  { %125 = vrot.lane.b32.xlu1 %v27_v3, %s1237_s11  ;;  %123 = vrot.lane.b32.xlu0 %v26_v1, %s1237_s11 }
  0x16   :  { %129 = vrot.lane.b32.xlu1 %v29_v2, %s1237_s11  ;;  %127 = vrot.lane.b32.xlu0 %v28_v0, %s1237_s11 }
  0x1a   :  { %163 = vrot.lane.b32.xlu1 %v27_v3, %s1238_s0  ;;  %161 = vrot.lane.b32.xlu0 %v26_v1, %s1238_s0  ;;  %v1390_v1 = vrot.slane %v1118_v58, %v63_v19  ;;  %v1394_v3 = vrot.slane %v1118_v58, %v75_v23 }
  0x1e   :  { %167 = vrot.lane.b32.xlu1 %v29_v2, %s1238_s0  ;;  %165 = vrot.lane.b32.xlu0 %v28_v0, %s1238_s0  ;;  %v1392_v2 = vrot.slane %v1118_v58, %v71_v21 }
  0x22   :  { %214 = vperm.xlu1 %1234, %v204_v6   ;;  %209 = vperm.xlu0 %1233, %v203_v7  }
  0x26   :  { %219 = vperm.xlu1 %1234, %v205_v8   ;;  %224 = vperm.xlu0 %1233, %v206_v9   ;;  %v1400_v9 = vrot.slane %v1119_v59, %v63_v19 }
  0x2a   :  { %601 = vperm.xlu1 %1234, %v434_v10   ;;  %v1402_v10 = vrot.slane %v1119_v59, %v71_v21  ;;  %v31_v21 = vld [vmem:[%s1606_s1 + $0x8] sm:$0xff] }
  0x74   :  { %v50_v13 = vpop.permute.xlu1 %49  ;;  %v46_v14 = vpop.permute.xlu0 %45 }
  0x78   :  { %v52_v20 = vpop.permute.xlu1 %51  ;;  %v48_v22 = vpop.permute.xlu0 %47 }
  0x79   :  { %v58_v26 = vsel %vm55_vm0, %v46_v14, %v48_v22  ;;  %v59_v32 = vsel %vm55_vm0, %v52_v20, %v46_v14  ;;  %v57_v36 = vsel %vm55_vm0, %v48_v22, %v50_v13  ;;  %v56_v40 = vsel %vm55_vm0, %v50_v13, %v52_v20  ;;  %v35_v22 = vld [vmem:[%s1606_s1 + $0x28] sm:$0xff] }
  0x7a   :  { %v82_v37 = vmul.f32 %v1336_v24, %v58_v26  ;;  %v81_v41 = vmul.f32 %v1342_v27, %v59_v32  ;;  %v83_v45 = vmul.f32 %v1344_v28, %v57_v36  ;;  %v84_v51 = vmul.f32 %v1354_v35, %v56_v40  ;;  %v33_v32 = vld [vmem:[%s1606_s1 + $0x18] sm:$0xff] }
  0x7b   :  { %v1408_v14 = vrot.slane %v1119_v59, %v75_v23 }
  0x7c   :  { %v88_v29 = vpop.permute.xlu1 %87  ;;  %v86_v30 = vpop.permute.xlu0 %85 }
  0x7d   :  { %v96_v33 = vsel %vm93_vm1, %v86_v30, %v88_v29 }
  0x7e   :  { %v120_v38 = vmul.f32 %v1338_v25, %v96_v33  ;;  %v37_v33 = vld [vmem:[%s1606_s1 + $0x38] sm:$0xff] }
  0x80   :  { %v92_v42 = vpop.permute.xlu1 %91  ;;  %v90_v43 = vpop.permute.xlu0 %89  ;;  %v1139_v44 = vpack.c.bf16 %v120_v38, %v82_v37 }
  0x81   :  { %v97_v46 = vsel %vm93_vm1, %v92_v42, %v86_v30  ;;  %v94_v47 = vsel %vm93_vm1, %v90_v43, %v92_v42  ;;  %v95_v48 = vsel %vm93_vm1, %v88_v29, %v90_v43  ;;  %v30_v42 = vld [vmem:[%s1606_s1] sm:$0xff] }
  0x82   :  { %v119_v49 = vmul.f32 %v1346_v31, %v97_v46  ;;  %v121_v50 = vmul.f32 %v1352_v34, %v95_v48  ;;  %1140 = vmatprep.subr.bf16.mxu0 %v1139_v44  ;;  %v122_v52 = vmul.f32 %v1360_v39, %v94_v47  ;;  %v34_v43 = vld [vmem:[%s1606_s1 + $0x20] sm:$0xff]  ;;  %v1159_v47 = vpack.c.bf16 %v37_v33, %v33_v32  ;;  %v32_v48 = vld [vmem:[%s1606_s1 + $0x10] sm:$0xff] }
  0x84   :  { %v126_v53 = vpop.permute.xlu1 %125  ;;  %v124_v54 = vpop.permute.xlu0 %123  ;;  %v1141_v55 = vpack.c.bf16 %v119_v49, %v81_v41  ;;  %v1151_v56 = vpack.c.bf16 %v122_v52, %v84_v51  ;;  %v1153_v57 = vpack.c.bf16 %v121_v50, %v83_v45  ;;  %v1147_v41 = vpack.c.bf16 %v35_v22, %v31_v21  ;;  %v36_v49 = vld [vmem:[%s1606_s1 + $0x30] sm:$0xff]  ;;  %v199_v52 = vld [vmem:[%s1607_s3] sm:$0xff] }
  0x85   :  { %v134_v0 = vsel %vm131_vm2, %v124_v54, %v126_v53  ;;  %v1149_v50 = vpack.c.bf16 %v34_v43, %v30_v42  ;;  %v1161_v51 = vpack.c.bf16 %v36_v49, %v32_v48 }
  0x86   :  { %1142 = vmatpush1.bf16.msra.mxu0 %v1141_v55  ;;  %1152 = vmatprep.subr.bf16.mxu1 %v1151_v56  ;;  %v158_v11 = vmul.f32 %v1383_v62, %v134_v0  ;;  %v202_v55 = vld [vmem:[%s1607_s3 + $0x18] sm:$0xff] }
  0x87   :  { %1154 = vmatpush1.bf16.msra.mxu1 %v1153_v57 }
  0x88   :  { %v130_v60 = vpop.permute.xlu1 %129  ;;  %v128_v61 = vpop.permute.xlu0 %127 }
  0x89   :  { %v135_v7 = vsel %vm131_vm2, %v130_v60, %v124_v54  ;;  %v133_v12 = vsel %vm131_vm2, %v126_v53, %v128_v61  ;;  %v132_v16 = vsel %vm131_vm2, %v128_v61, %v130_v60  ;;  %v200_v53 = vld [vmem:[%s1607_s3 + $0x8] sm:$0xff]  ;;  %v201_v54 = vld [vmem:[%s1607_s3 + $0x10] sm:$0xff] }
  0x8a   :  { %v157_v17 = vmul.f32 %v1390_v1, %v135_v7  ;;  %v159_v26 = vmul.f32 %v1392_v2, %v133_v12  ;;  %v160_v36 = vmul.f32 %v1394_v3, %v132_v16 }
  0x8c   :  { %v164_v5 = vpop.permute.xlu1 %163  ;;  %v162_v6 = vpop.permute.xlu0 %161 }
  0x8d   :  { %v172_v8 = vsel %vm169_vm3, %v162_v6, %v164_v5 }
  0x8e   :  { %v196_v13 = vmul.f32 %v1386_v63, %v172_v8 }
  0x90   :  { %v168_v18 = vpop.permute.xlu1 %167  ;;  %v166_v20 = vpop.permute.xlu0 %165  ;;  %v1143_v19 = vpack.c.bf16 %v196_v13, %v158_v11 }
  0x91   :  { %v173_v23 = vsel %vm169_vm3, %v168_v18, %v162_v6  ;;  %v170_v29 = vsel %vm169_vm3, %v166_v20, %v168_v18  ;;  %v171_v30 = vsel %vm169_vm3, %v164_v5, %v166_v20 }
  0x92   :  { %v195_v37 = vmul.f32 %v1400_v9, %v173_v23  ;;  %v197_v38 = vmul.f32 %v1402_v10, %v171_v30  ;;  %v198_v40 = vmul.f32 %v1408_v14, %v170_v29  ;;  %1144 = vmatprep.subr.bf16.mxu0 %v1143_v19 }
  0x94   :  { %v1145_v44 = vpack.c.bf16 %v195_v37, %v157_v17  ;;  %v1155_v45 = vpack.c.bf16 %v198_v40, %v160_v36  ;;  %v1157_v46 = vpack.c.bf16 %v197_v38, %v159_v26 }
  0x96   :  { %1146 = vmatpush1.bf16.msra.mxu0 %v1145_v44  ;;  %1156 = vmatprep.subr.bf16.mxu1 %v1155_v45 }
  0x97   :  { %1158 = vmatpush1.bf16.msra.mxu1 %v1157_v46  ;;  %1148 = vmatprep.subr.bf16.mxu0 %v1147_v41 }
  0x98   :  { %1160 = vmatprep.subr.bf16.mxu1 %v1159_v47 }
  0x9a   :  { %1150 = vmatpush1.bf16.msra.mxu0 %v1149_v50 }
  0x9b   :  { %1162 = vmatpush1.bf16.msra.mxu1 %v1161_v51 }
  0x9d   :  { %1120 = vmatmul.mubr.msk.f32.vlgmr.msra.gmra.mrb[0].mxu0 %vm227_vm4, %v199_v52 }
  0x9e   :  { %1124 = vmatmul.mubr.msk.f32.vlgmr.msra.gmra.mrb[0].mxu1 %vm227_vm4, %v199_v52  ;;  %310 = vmatprep.mubr.f32.mxu0 %v1239_v4 }
  0x9f   :  { %399 = vmatprep.mubr.f32.mxu1 %v1239_v4 }
  0xa1   :  { %1121 = vmatmul.mubr.msk.f32.gmra.mrb[2].mxu0 %vm227_vm4, %v200_v53  ;;  %v210_v57 = vpop.permute.xlu0 %209  ;;  %v215_v5 = vpop.permute.xlu1 %214 }
  0xa2   :  { %1125 = vmatmul.mubr.msk.f32.gmra.mrb[2].mxu1 %vm227_vm4, %v200_v53  ;;  %316 = vmatprep.mubr.f32.mxu0 %v1239_v4 }
  0xa3   :  { %405 = vmatprep.mubr.f32.mxu1 %v1239_v4 }
  0xa5   :  { %1122 = vmatmul.mubr.msk.f32.gmra.mrb[4].mxu0 %vm227_vm4, %v201_v54  ;;  %v220_v40 = vpop.permute.xlu1 %219  ;;  %v225_v46 = vpop.permute.xlu0 %224 }
  0xa6   :  { %1126 = vmatmul.mubr.msk.f32.gmra.mrb[4].mxu1 %vm227_vm4, %v201_v54  ;;  %322 = vmatprep.mubr.f32.mxu0 %v1239_v4 }
  0xa7   :  { %411 = vmatprep.mubr.f32.mxu1 %v1239_v4 }
  0xa9   :  { %1123 = vmatmul.mubr.msk.f32.gmra.mrb[6].mxu0 %vm227_vm4, %v202_v55 }
  0xaa   :  { %1127 = vmatmul.mubr.msk.f32.gmra.mrb[6].mxu1 %vm227_vm4, %v202_v55  ;;  %505 = vmatprep.mubr.f32.mxu0 %v1239_v4 }
  0xab   :  { %576 = vmatprep.mubr.f32.mxu1 %v1239_v4 }
 0x170   :  { %v306_v56 = vpop.f32.mrb[0].mxu0 }
 0x171   :  { %v308_v58 = vpop.f32.mrb[1].mxu0  ;;  %v395_v59 = vpop.f32.mrb[0].mxu1  ;;  %v307_v0 = vadd.f32 %v306_v56, %v210_v57 }
 0x172   :  { %v396_v60 = vadd.f32 %v395_v59, %v210_v57  ;;  %v397_v61 = vpop.f32.mrb[1].mxu1  ;;  %v309_v6 = vadd.f32 %v308_v58, %v210_v57 }
 0x173   :  { %v398_v11 = vadd.f32 %v397_v61, %v210_v57  ;;  %v418_v19 = vmax.f32 %v307_v0, 0.0 }
 0x174   :  { %v312_v7 = vpop.f32.mrb[2].mxu0  ;;  %v420_v16 = vmax.f32 %v396_v60, 0.0  ;;  %v419_v26 = vmax.f32 %v309_v6, 0.0 }
 0x175   :  { %v313_v8 = vadd.f32 %v312_v7, %v215_v5  ;;  %v314_v12 = vpop.f32.mrb[3].mxu0  ;;  %v401_v13 = vpop.f32.mrb[2].mxu1  ;;  %v421_v33 = vmax.f32 %v398_v11, 0.0 }
 0x176   :  { %v315_v17 = vadd.f32 %v314_v12, %v215_v5  ;;  %v402_v18 = vadd.f32 %v401_v13, %v215_v5  ;;  %v403_v20 = vpop.f32.mrb[3].mxu1 }
 0x177   :  { %v422_v21 = vmax.f32 %v313_v8, 0.0  ;;  %v404_v22 = vadd.f32 %v403_v20, %v215_v5  ;;  %v1136_v20 = vld [vmem:[%s1608_s5 + $0x18] sm:$0x1f] }
 0x178   :  { %v423_v23 = vmax.f32 %v315_v17, 0.0  ;;  %v424_v29 = vmax.f32 %v402_v18, 0.0  ;;  %v318_v30 = vpop.f32.mrb[4].mxu0  ;;  %v1130_v17 = vld [vmem:[%s1608_s5 + $0x8] sm:$0x1f] }
 0x179   :  { %v1476_v32 = vpack.c.bf16 %v422_v21, %v418_v19  ;;  %v425_v36 = vmax.f32 %v404_v22, 0.0  ;;  %v320_v37 = vpop.f32.mrb[5].mxu0  ;;  %v407_v38 = vpop.f32.mrb[4].mxu1  ;;  %v319_v45 = vadd.f32 %v318_v30, %v220_v40  ;;  %v1133_v18 = vld [vmem:[%s1608_s5 + $0x10] sm:$0x1f] }
 0x17a   :  { %v1478_v41 = vpack.c.bf16 %v423_v23, %v419_v26  ;;  %v1480_v42 = vpack.c.bf16 %v424_v29, %v420_v16  ;;  %v409_v43 = vpop.f32.mrb[5].mxu1  ;;  %v321_v47 = vadd.f32 %v320_v37, %v220_v40  ;;  %v408_v48 = vadd.f32 %v407_v38, %v220_v40  ;;  %v436_v16 = vld [vmem:[%s1608_s5] sm:$0x1f] }
 0x17b   :  { %v1482_v44 = vpack.c.bf16 %v425_v36, %v421_v33  ;;  %v410_v50 = vadd.f32 %v409_v43, %v220_v40  ;;  %v426_v57 = vmax.f32 %v319_v45, 0.0  ;;  %v602_v43 = vpop.permute.xlu1 %601 }
 0x17c   :  { %v324_v49 = vpop.f32.mrb[6].mxu0  ;;  %1164 = vmatprep.subr.bf16.mxu0 %v1478_v41  ;;  %v427_v60 = vmax.f32 %v321_v47, 0.0  ;;  %v428_v61 = vmax.f32 %v408_v48, 0.0 }
 0x17d   :  { %v325_v51 = vadd.f32 %v324_v49, %v225_v46  ;;  %v326_v52 = vpop.f32.mrb[7].mxu0  ;;  %v413_v53 = vpop.f32.mrb[6].mxu1  ;;  %1166 = vmatpush1.bf16.msra.mxu0 %v1476_v32  ;;  %1172 = vmatprep.subr.bf16.mxu1 %v1482_v44  ;;  %v429_v6 = vmax.f32 %v410_v50, 0.0 }
 0x17e   :  { %v327_v54 = vadd.f32 %v326_v52, %v225_v46  ;;  %v414_v55 = vadd.f32 %v413_v53, %v225_v46  ;;  %v415_v56 = vpop.f32.mrb[7].mxu1  ;;  %1174 = vmatpush1.bf16.msra.mxu1 %v1480_v42 }
 0x17f   :  { %v430_v58 = vmax.f32 %v325_v51, 0.0  ;;  %v416_v59 = vadd.f32 %v415_v56, %v225_v46 }
 0x180   :  { %v431_v0 = vmax.f32 %v327_v54, 0.0  ;;  %v432_v5 = vmax.f32 %v414_v55, 0.0 }
 0x181   :  { %v1169_v7 = vpack.c.bf16 %v430_v58, %v426_v57  ;;  %v433_v8 = vmax.f32 %v416_v59, 0.0 }
 0x182   :  { %v1167_v11 = vpack.c.bf16 %v431_v0, %v427_v60  ;;  %v1177_v12 = vpack.c.bf16 %v432_v5, %v428_v61 }
 0x183   :  { %v1175_v13 = vpack.c.bf16 %v433_v8, %v429_v6 }
 0x184   :  { %1168 = vmatprep.subr.bf16.mxu0 %v1167_v11 }
 0x185   :  { %1170 = vmatpush1.bf16.msra.mxu0 %v1169_v7  ;;  %1176 = vmatprep.subr.bf16.mxu1 %v1175_v13 }
 0x186   :  { %1178 = vmatpush1.bf16.msra.mxu1 %v1177_v12  ;;  %1180 = vmatprep.subr.bf16.mxu0 %v1478_v41 }
 0x187   :  { %1188 = vmatprep.subr.bf16.mxu1 %v1482_v44 }
 0x188   :  { %1128 = vmatmul.mubr.msk.f32.vlgmr.msra.gmra.mrb[8].mxu0 %vm437_vm5, %v436_v16 }
 0x189   :  { %1182 = vmatpush1.bf16.msra.mxu0 %v1476_v32  ;;  %1129 = vmatmul.mubr.msk.f32.vlgmr.msra.gmra.mrb[8].mxu1 %vm437_vm5, %v436_v16 }
 0x18a   :  { %1184 = vmatprep.subr.bf16.mxu0 %v1167_v11  ;;  %1190 = vmatpush1.bf16.msra.mxu1 %v1480_v42 }
 0x18b   :  { %1192 = vmatprep.subr.bf16.mxu1 %v1175_v13  ;;  %677 = vmatprep.mubr.f32.mxu0 %v1239_v4 }
 0x18c   :  { %748 = vmatprep.mubr.f32.mxu1 %v1239_v4 }
 0x18d   :  { %1186 = vmatpush1.bf16.msra.mxu0 %v1169_v7 }
 0x18e   :  { %1194 = vmatpush1.bf16.msra.mxu1 %v1177_v12  ;;  %1196 = vmatprep.subr.bf16.mxu0 %v1478_v41 }
 0x18f   :  { %1204 = vmatprep.subr.bf16.mxu1 %v1482_v44 }
 0x190   :  { %1131 = vmatmul.mubr.msk.f32.vlgmr.msra.gmra.mrb[10].mxu0 %vm437_vm5, %v1130_v17 }
 0x191   :  { %1198 = vmatpush1.bf16.msra.mxu0 %v1476_v32  ;;  %1132 = vmatmul.mubr.msk.f32.vlgmr.msra.gmra.mrb[10].mxu1 %vm437_vm5, %v1130_v17 }
 0x192   :  { %1200 = vmatprep.subr.bf16.mxu0 %v1167_v11  ;;  %1206 = vmatpush1.bf16.msra.mxu1 %v1480_v42 }
 0x193   :  { %1208 = vmatprep.subr.bf16.mxu1 %v1175_v13  ;;  %844 = vmatprep.mubr.f32.mxu0 %v1239_v4 }
 0x194   :  { %915 = vmatprep.mubr.f32.mxu1 %v1239_v4 }
 0x195   :  { %1202 = vmatpush1.bf16.msra.mxu0 %v1169_v7 }
 0x196   :  { %1210 = vmatpush1.bf16.msra.mxu1 %v1177_v12  ;;  %1212 = vmatprep.subr.bf16.mxu0 %v1478_v41 }
 0x197   :  { %1220 = vmatprep.subr.bf16.mxu1 %v1482_v44 }
 0x198   :  { %1134 = vmatmul.mubr.msk.f32.vlgmr.msra.gmra.mrb[12].mxu0 %vm437_vm5, %v1133_v18 }
 0x199   :  { %1214 = vmatpush1.bf16.msra.mxu0 %v1476_v32  ;;  %1135 = vmatmul.mubr.msk.f32.vlgmr.msra.gmra.mrb[12].mxu1 %vm437_vm5, %v1133_v18 }
 0x19a   :  { %1216 = vmatprep.subr.bf16.mxu0 %v1167_v11  ;;  %1222 = vmatpush1.bf16.msra.mxu1 %v1480_v42 }
 0x19b   :  { %1224 = vmatprep.subr.bf16.mxu1 %v1175_v13  ;;  %1011 = vmatprep.mubr.f32.mxu0 %v1239_v4 }
 0x19c   :  { %1082 = vmatprep.mubr.f32.mxu1 %v1239_v4 }
 0x19d   :  { %1218 = vmatpush1.bf16.msra.mxu0 %v1169_v7 }
 0x19e   :  { %1226 = vmatpush1.bf16.msra.mxu1 %v1177_v12 }
 0x1a0   :  { %1137 = vmatmul.mubr.msk.f32.vlgmr.msra.gmra.mrb[14].mxu0 %vm437_vm5, %v1136_v20 }
 0x1a1   :  { %1138 = vmatmul.mubr.msk.f32.vlgmr.msra.gmra.mrb[14].mxu1 %vm437_vm5, %v1136_v20 }
 0x25b   :  { %v507_v19 = vpop.f32.mrb[8].mxu0 }
 0x25c   :  { %583 = vrot.lane.b32.xlu0 %v507_v19, %s1235_s28  ;;  %v509_v21 = vpop.f32.mrb[9].mxu0  ;;  %v578_v22 = vpop.f32.mrb[8].mxu1 }
 0x25d   :  { %585 = vrot.lane.b32.xlu1 %v509_v21, %s1235_s28  ;;  %v580_v26 = vpop.f32.mrb[9].mxu1 }
 0x260   :  { %587 = vrot.lane.b32.xlu0 %v578_v22, %s1235_s28 }
 0x261   :  { %589 = vrot.lane.b32.xlu1 %v580_v26, %s1235_s28 }
 0x263   :  { %v679_v4 = vpop.f32.mrb[10].mxu0 }
 0x264   :  { %755 = vrot.lane.b32.xlu0 %v679_v4, %s1236_s10  ;;  %v681_v23 = vpop.f32.mrb[11].mxu0  ;;  %v750_v29 = vpop.f32.mrb[10].mxu1 }
 0x265   :  { %757 = vrot.lane.b32.xlu1 %v681_v23, %s1236_s10  ;;  %v752_v30 = vpop.f32.mrb[11].mxu1 }
 0x268   :  { %759 = vrot.lane.b32.xlu0 %v750_v29, %s1236_s10 }
 0x269   :  { %761 = vrot.lane.b32.xlu1 %v752_v30, %s1236_s10 }
 0x26b   :  { %v846_v32 = vpop.f32.mrb[12].mxu0 }
 0x26c   :  { %922 = vrot.lane.b32.xlu0 %v846_v32, %s1237_s11  ;;  %v848_v33 = vpop.f32.mrb[13].mxu0  ;;  %v917_v36 = vpop.f32.mrb[12].mxu1 }
 0x26d   :  { %924 = vrot.lane.b32.xlu1 %v848_v33, %s1237_s11  ;;  %v919_v37 = vpop.f32.mrb[13].mxu1 }
 0x270   :  { %926 = vrot.lane.b32.xlu0 %v917_v36, %s1237_s11 }
 0x271   :  { %928 = vrot.lane.b32.xlu1 %v919_v37, %s1237_s11 }
 0x273   :  { %v1013_v38 = vpop.f32.mrb[14].mxu0 }
 0x274   :  { %1089 = vrot.lane.b32.xlu0 %v1013_v38, %s1238_s0  ;;  %v1015_v40 = vpop.f32.mrb[15].mxu0  ;;  %v1084_v41 = vpop.f32.mrb[14].mxu1 }
 0x275   :  { %1091 = vrot.lane.b32.xlu1 %v1015_v40, %s1238_s0  ;;  %v1086_v42 = vpop.f32.mrb[15].mxu1 }
 0x278   :  { %1093 = vrot.lane.b32.xlu0 %v1084_v41, %s1238_s0 }
 0x279   :  { %1095 = vrot.lane.b32.xlu1 %v1086_v42, %s1238_s0 }
 0x2ce   :  { %v584_v44 = vpop.permute.xlu0 %583 }
 0x2cf   :  { %v586_v45 = vpop.permute.xlu1 %585 }
 0x2d0   :  { %v593_v52 = vsel %vm55_vm0, %v584_v44, %v586_v45 }
 0x2d1   :  { %v596_v57 = vmul.f32 %v593_v52, %v1336_v24 }
 0x2d2   :  { %v588_v46 = vpop.permute.xlu0 %587 }
 0x2d3   :  { %v590_v47 = vpop.permute.xlu1 %589  ;;  %v592_v55 = vsel %vm55_vm0, %v586_v45, %v588_v46  ;;  %v605_v13 = vadd.f32 %v602_v43, %v596_v57 }
 0x2d4   :  { %v591_v58 = vsel %vm55_vm0, %v588_v46, %v590_v47  ;;  %v594_v59 = vsel %vm55_vm0, %v590_v47, %v584_v44  ;;  %v597_v0 = vmul.f32 %v592_v55, %v1344_v28 }
 0x2d5   :  { %v595_v24 = vmul.f32 %v594_v59, %v1342_v27  ;;  %v598_v8 = vmul.f32 %v591_v58, %v1354_v35 }
 0x2d6   :  { %v756_v48 = vpop.permute.xlu0 %755  ;;  %v606_v18 = vadd.f32 %v602_v43, %v597_v0 }
 0x2d7   :  { %v758_v49 = vpop.permute.xlu1 %757  ;;  %v607_v26 = vadd.f32 %v602_v43, %v598_v8 }
 0x2d8   :  { %v765_v56 = vsel %vm93_vm1, %v756_v48, %v758_v49 }
 0x2d9   :  { %v768_v5 = vmul.f32 %v765_v56, %v1338_v25 }
 0x2da   :  { %v760_v50 = vpop.permute.xlu0 %759 }
 0x2db   :  { %v762_v51 = vpop.permute.xlu1 %761  ;;  %v764_v6 = vsel %vm93_vm1, %v758_v49, %v760_v50  ;;  %v772_v20 = vadd.f32 %v768_v5, %v605_v13 }
 0x2dc   :  { %v763_v11 = vsel %vm93_vm1, %v760_v50, %v762_v51  ;;  %v766_v12 = vsel %vm93_vm1, %v762_v51, %v756_v48  ;;  %v769_v28 = vmul.f32 %v764_v6, %v1352_v34 }
 0x2dd   :  { %v767_v19 = vmul.f32 %v766_v12, %v1346_v31  ;;  %v770_v21 = vmul.f32 %v763_v11, %v1360_v39 }
 0x2de   :  { %v923_v53 = vpop.permute.xlu0 %922  ;;  %v773_v33 = vadd.f32 %v769_v28, %v606_v18 }
 0x2df   :  { %v925_v54 = vpop.permute.xlu1 %924  ;;  %v774_v37 = vadd.f32 %v770_v21, %v607_v26 }
 0x2e0   :  { %v932_v60 = vsel %vm131_vm2, %v923_v53, %v925_v54 }
 0x2e1   :  { %v935_v16 = vmul.f32 %v932_v60, %v1383_v62  ;;  %v604_v62 = vadd.f32 %v602_v43, %v595_v24 }
 0x2e2   :  { %v927_v61 = vpop.permute.xlu0 %926 }
 0x2e3   :  { %v929_v7 = vpop.permute.xlu1 %928  ;;  %v931_v25 = vsel %vm131_vm2, %v925_v54, %v927_v61  ;;  %v939_v23 = vadd.f32 %v935_v16, %v772_v20  ;;  %v771_v31 = vadd.f32 %v767_v19, %v604_v62 }
 0x2e4   :  { %v930_v17 = vsel %vm131_vm2, %v927_v61, %v929_v7  ;;  %v933_v27 = vsel %vm131_vm2, %v929_v7, %v923_v53  ;;  %v936_v4 = vmul.f32 %v931_v25, %v1392_v2 }
 0x2e5   :  { %v934_v29 = vmul.f32 %v933_v27, %v1390_v1  ;;  %v937_v30 = vmul.f32 %v930_v17, %v1394_v3 }
 0x2e6   :  { %v1090_v35 = vpop.permute.xlu0 %1089  ;;  %v940_v2 = vadd.f32 %v936_v4, %v773_v33 }
 0x2e7   :  { %v1092_v22 = vpop.permute.xlu1 %1091  ;;  %v938_v3 = vadd.f32 %v934_v29, %v771_v31 }
 0x2e8   :  { %v1099_v34 = vsel %vm169_vm3, %v1090_v35, %v1092_v22 }
 0x2e9   :  { %v1102_v32 = vmul.f32 %v1099_v34, %v1386_v63  ;;  %v941_v63 = vadd.f32 %v937_v30, %v774_v37 }
 0x2ea   :  { %v1094_v36 = vpop.permute.xlu0 %1093 }
 0x2eb   :  { %v1106_v39 = vadd.f32 %v1102_v32, %v939_v23  ;;  %v1098_v38 = vsel %vm169_vm3, %v1092_v22, %v1094_v36  ;;  %v1096_v40 = vpop.permute.xlu1 %1095 }
 0x2ec   :  { %v1103_v41 = vmul.f32 %v1098_v38, %v1402_v10  ;;  %v1097_v42 = vsel %vm169_vm3, %v1094_v36, %v1096_v40  ;;  %v1100_v1 = vsel %vm169_vm3, %v1096_v40, %v1090_v35 }
 0x2ed   :  { %1110 = vst [vmem:[%s1609_s7 + $0x8] sm:$0x1f] %v1106_v39  ;;  %v1101_v43 = vmul.f32 %v1100_v1, %v1400_v9  ;;  %v1104_v44 = vmul.f32 %v1097_v42, %v1408_v14 }
 0x2ee   :  { %v1107_v45 = vadd.f32 %v1103_v41, %v940_v2 }
 0x2ef   :  { %v1105_v46 = vadd.f32 %v1101_v43, %v938_v3  ;;  %v1108_v47 = vadd.f32 %v1104_v44, %v941_v63 }
 0x2f0   :  { %1111 = vst [vmem:[%s1609_s7 + $0x10] sm:$0x1f] %v1107_v45 }
 0x2f1   :  { %1109 = vst [vmem:[%s1609_s7] sm:$0x1f] %v1105_v46  ;;  %1112 = vst [vmem:[%s1609_s7 + $0x18] sm:$0x1f] %v1108_v47 }

</bundles_post_ra>
